<compile_context>
chip_gen: v7x
topology: tpu7x:2x2x1
jax: 0.10.0
libtpu: 0.0.40
codegen_flags: <defaults>
</compile_context>

<pallas_src>
import functools

import jax
import jax.numpy as jnp
from jax.experimental import pallas as pl
from jax.experimental.pallas import tpu as pltpu


def _round_up(x: int, m: int) -> int:
    return (x + m - 1) // m * m


# ----------------------------- Pallas kernel ------------------------------- #

def qkv_proj_kernel(x_ref, w_ref, b_ref, o_ref):
    """One row tile of the QKV projection.

    x: (TM, C)    activation rows (compute dtype, e.g. bf16)
    w: (C, NP)    to_qkv weight, pre-transposed + lane-padded (grid-invariant)
    b: (1, NP)    concatenated [q_bias, 0, v_bias] in f32 (grid-invariant)
    o: (TM, NP)   x @ w + b, f32 accumulation on the MXU, stored in o.dtype
    """
    acc = jnp.dot(x_ref[...], w_ref[...], preferred_element_type=jnp.float32)
    o_ref[...] = (acc + b_ref[...]).astype(o_ref.dtype)


# --------------------------- Tiling / capability ---------------------------- #

@functools.lru_cache(maxsize=None)
def _supports_single_buffering() -> bool:
    """Probe whether this JAX/Mosaic build accepts pipeline_mode=pl.Buffered(1)."""
    try:
        def _copy(x_ref, o_ref):
            o_ref[...] = x_ref[...]

        fn = pl.pallas_call(
            _copy,
            out_shape=jax.ShapeDtypeStruct((16, 128), jnp.float32),
            grid=(2,),
            in_specs=[pl.BlockSpec((8, 128), lambda i: (0, 0),
                                   pipeline_mode=pl.Buffered(1))],
            out_specs=pl.BlockSpec((8, 128), lambda i: (i, 0)),
        )
        jax.jit(fn).lower(jax.ShapeDtypeStruct((8, 128), jnp.float32)).compile()
        return True
    except Exception:
        return False


def _choose_tiling(rows, c_in, n_pad, in_itemsize, out_itemsize, row_tile):
    """Pick the row tile (multiple of 8), padded row count and a VMEM limit."""
    try:
        vmem_bytes = int(pltpu.get_tpu_info().vmem_capacity_bytes)
    except Exception:
        vmem_bytes = 64 * 1024 * 1024          # conservative default (v7x)

    if row_tile is None:
        # Generation-aware cap: 128 MiB parts (v5e/v6e) take bigger row tiles,
        # 64 MiB v7x stays at 512 (its two TCs each pipeline their own halves).
        row_tile = 2048 if vmem_bytes >= (100 << 20) else 512

    # Resident (single-buffered) weight + f32 bias; x/out row tiles are
    # double-buffered by the pipeline.
    resident = n_pad * c_in * in_itemsize + n_pad * 4
    per_row = 2 * (c_in * in_itemsize + n_pad * out_itemsize)
    budget = max(vmem_bytes // 2 - resident, per_row * 8)
    row_tile = min(row_tile, max(8, budget // per_row))

    # >= 2 grid steps whenever rows allow it (v7x has 2 TensorCores to feed).
    half = _round_up((rows + 1) // 2, 8)
    tm = min(int(row_tile), half, _round_up(rows, 8))
    tm = max(8, (tm // 8) * 8)                 # multiple of 8 sublanes
    rows_p = _round_up(rows, tm)

    vmem_need = resident + per_row * tm
    vmem_limit = int(min(vmem_bytes * 3 // 4, max(2 * vmem_need, 32 << 20)))
    return tm, rows_p, vmem_limit


# ------------------------------- Wrapper ----------------------------------- #

def window_attention_v2_forward(x, w_qkv, q_bias, v_bias, num_heads, *,
                                row_tile=None, compute_dtype=jnp.bfloat16,
                                out_dtype=None, return_flat=False):
    """Reproduces WindowAttentionV2.forward: returns qkv of shape (3, B, H, N, Dh).

    compute_dtype=jnp.float32 reproduces the module's exact f32 numerics;
    the bf16 default halves HBM/VMEM traffic (accumulation is always f32).
    """
    B, N, C = x.shape
    head_dim = C // num_heads
    compute_dtype = jnp.dtype(compute_dtype) if compute_dtype is not None else x.dtype
    out_dtype = jnp.dtype(out_dtype) if out_dtype is not None else compute_dtype

    # qkv_bias = cat([q_bias, zeros_like(v_bias), v_bias])  (as in forward()).
    qkv_bias = jnp.concatenate(
        [q_bias, jnp.zeros_like(v_bias), v_bias]).astype(jnp.float32)

    rows = B * N
    n_out = 3 * C
    n_pad = _round_up(n_out, 128)              # lane-dense output -> unmasked stores

    tm, rows_p, vmem_limit = _choose_tiling(
        rows, C, n_pad, compute_dtype.itemsize, out_dtype.itemsize, row_tile)

    xf = x.reshape(rows, C).astype(compute_dtype)
    # One-time weight transpose to (C, 3C): keeps the in-kernel contraction in the
    # MXU-native (M,K)x(K,N) form, so the grid-invariant RHS never needs a per-tile
    # XLU transpose.  Padding the output (lane) dim keeps the weight lane-dense too.
    wq = w_qkv.T.astype(compute_dtype)
    if rows_p != rows:
        xf = jnp.pad(xf, ((0, rows_p - rows), (0, 0)))
    if n_pad != n_out:
        wq = jnp.pad(wq, ((0, 0), (0, n_pad - n_out)))
        qkv_bias = jnp.pad(qkv_bias, (0, n_pad - n_out))
    bias_p = qkv_bias.reshape(1, n_pad)

    # Grid-invariant operands: single-buffer them when the build supports it
    # (saves a full extra weight copy of VMEM on large C / v7x).
    resident_kw = {}
    if _supports_single_buffering():
        resident_kw = dict(pipeline_mode=pl.Buffered(1))

    qkv_flat = pl.pallas_call(
        qkv_proj_kernel,
        out_shape=jax.ShapeDtypeStruct((rows_p, n_pad), out_dtype),
        grid_spec=pl.GridSpec(
            grid=(rows_p // tm,),
            in_specs=[
                pl.BlockSpec((tm, C), lambda i: (i, 0)),              # row tile
                pl.BlockSpec((C, n_pad), lambda i: (0, 0), **resident_kw),  # weight
                pl.BlockSpec((1, n_pad), lambda i: (0, 0), **resident_kw),  # bias
            ],
            out_specs=pl.BlockSpec((tm, n_pad), lambda i: (i, 0)),
        ),
        compiler_params=pltpu.CompilerParams(
            dimension_semantics=("parallel",),   # shard row tiles over TensorCores
            vmem_limit_bytes=vmem_limit,
        ),
    )(xf, wq, bias_p)

    # Drop padding; (rows, 3C) reshapes for free to (B, N, 3, H, Dh).
    qkv = qkv_flat[:rows, :n_out].reshape(B, N, 3, num_heads, head_dim)
    if return_flat:
        # Permute-free layout for a fused downstream consumer (index it directly).
        return qkv
    # TODO(synk): this permute is the module's return contract; it costs one extra
    # HBM round trip of qkv into a lane-sparse Dh-minor layout.  Fused consumers
    # should use return_flat=True instead.
    return qkv.transpose(2, 0, 3, 1, 4)

    # NOTE: the cosine attention normalize(q)@normalize(k)^T, logit_scale clamp,
    # relative-position-bias MLP, softmax, dropouts and proj Linear never affect
    # the returned qkv (forward returns it untouched), so they are not lowered.


# --------------------------------- Main ------------------------------------ #

if __name__ == "__main__":
    # Module config: in_channel=32, window_size=(4, 4) -> N = 16, num_heads=4.
    # B = num_windows * batch = 8 so rows=128 gives >= 2 grid steps (real pipeline).
    in_channel = 32
    window_size = (4, 4)
    num_heads = 4
    N = window_size[0] * window_size[1]
    B = 8
    head_dim = in_channel // num_heads

    key = jax.random.PRNGKey(0)
    k_x, k_w, k_qb, k_vb = jax.random.split(key, 4)

    x = jax.random.normal(k_x, (B, N, in_channel), dtype=jnp.float32)
    # to_qkv.weight: (3C, C).  q_bias / v_bias random so the bias concat is exercised.
    w_qkv = 0.02 * jax.random.normal(k_w, (3 * in_channel, in_channel), jnp.float32)
    q_bias = 0.1 * jax.random.normal(k_qb, (in_channel,), jnp.float32)
    v_bias = 0.1 * jax.random.normal(k_vb, (in_channel,), jnp.float32)

    # Pure-JAX reference of the returned qkv (f32).
    qkv_bias_ref = jnp.concatenate([q_bias, jnp.zeros_like(v_bias), v_bias])
    ref = x.reshape(B * N, in_channel) @ w_qkv.T + qkv_bias_ref
    ref = ref.reshape(B, N, 3, num_heads, head_dim).transpose(2, 0, 3, 1, 4)

    # 1) Exact-numerics path (matches the PyTorch f32 module): strict tolerance.
    fwd_f32 = jax.jit(functools.partial(window_attention_v2_forward,
                                        num_heads=num_heads,
                                        compute_dtype=jnp.float32))
    out_f32 = jax.block_until_ready(fwd_f32(x, w_qkv, q_bias, v_bias))
    assert out_f32.shape == (3, B, num_heads, N, head_dim), out_f32.shape
    err32 = float(jnp.max(jnp.abs(out_f32 - ref)))
    assert jnp.allclose(out_f32, ref, atol=1e-5, rtol=1e-5), err32

    # 2) Default performance path: bf16 inputs/outputs, f32 MXU accumulation.
    fwd = jax.jit(functools.partial(window_attention_v2_forward,
                                    num_heads=num_heads))
    out_bf16 = jax.block_until_ready(fwd(x, w_qkv, q_bias, v_bias))
    assert out_bf16.shape == (3, B, num_heads, N, head_dim), out_bf16.shape
    assert out_bf16.dtype == jnp.bfloat16, out_bf16.dtype
    err16 = float(jnp.max(jnp.abs(out_bf16.astype(jnp.float32) - ref)))
    assert jnp.allclose(out_bf16.astype(jnp.float32), ref, atol=3e-2, rtol=3e-2), err16

    print("KERNEL_OK")
</pallas_src>

<mosaic_0001>
module attributes {stable_mosaic.version = 11 : i64} {
  func.func @qkv_proj_kernel(%arg0: i32, %arg1: memref<64x32xf32, #tpu.memory_space<vmem>>, %arg2: memref<32x128xf32, #tpu.memory_space<vmem>>, %arg3: memref<1x128xf32, #tpu.memory_space<vmem>>, %arg4: memref<64x128xf32, #tpu.memory_space<vmem>>) attributes {dimension_semantics = [#tpu.dimension_semantics<parallel>], iteration_bounds = array<i64: 2>, scalar_prefetch = 0 : i64, scratch_operands = 0 : i64, tpu.core_type = #tpu.core_type<tc>, window_params = [{transform_indices = @transform_0, window_bounds = array<i64: 64, 32>}, {pipeline_mode = #tpu.pipeline_mode<synchronous>, transform_indices = @transform_1, window_bounds = array<i64: 32, 128>}, {pipeline_mode = #tpu.pipeline_mode<synchronous>, transform_indices = @transform_2, window_bounds = array<i64: 1, 128>}, {transform_indices = @transform_3, window_bounds = array<i64: 64, 128>}]} {
    %c0 = arith.constant 0 : index
    %c0_0 = arith.constant 0 : index
    %0 = vector.load %arg1[%c0, %c0_0] : memref<64x32xf32, #tpu.memory_space<vmem>>, vector<64x32xf32>
    %c0_1 = arith.constant 0 : index
    %c0_2 = arith.constant 0 : index
    %1 = vector.load %arg2[%c0_1, %c0_2] : memref<32x128xf32, #tpu.memory_space<vmem>>, vector<32x128xf32>
    %cst = arith.constant dense<0.000000e+00> : vector<64x128xf32>
    %2 = tpu.matmul %0, %1, %cst {dimension_numbers = #tpu.dot_dimension_numbers<[1], [0], [0], [1], [0, 0, 1, 1], [], []>} : vector<64x32xf32>, vector<32x128xf32>, vector<64x128xf32> -> vector<64x128xf32>
    %c0_3 = arith.constant 0 : index
    %c0_4 = arith.constant 0 : index
    %3 = vector.load %arg3[%c0_3, %c0_4] : memref<1x128xf32, #tpu.memory_space<vmem>>, vector<1x128xf32>
    %4 = vector.broadcast %3 : vector<1x128xf32> to vector<64x128xf32>
    %5 = arith.addf %2, %4 : vector<64x128xf32>
    %c0_5 = arith.constant 0 : index
    %c0_6 = arith.constant 0 : index
    %6 = vector.load %arg4[%c0_5, %c0_6] : memref<64x128xf32, #tpu.memory_space<vmem>>, vector<64x128xf32>
    tpu.vector_store %arg4[%c0_5, %c0_6], %5 {strides = array<i32>} : memref<64x128xf32, #tpu.memory_space<vmem>>, vector<64x128xf32>,
    return
  }
  func.func @transform_0(%arg0: i32) -> (i32, i32) {
    %c0_i32 = arith.constant 0 : i32
    %c0_i32_0 = arith.constant 0 : i32
    return %arg0, %c0_i32 : i32, i32
  }
  func.func @transform_1(%arg0: i32) -> (i32, i32) {
    %c0_i32 = arith.constant 0 : i32
    %c0_i32_0 = arith.constant 0 : i32
    %c0_i32_1 = arith.constant 0 : i32
    return %c0_i32, %c0_i32_0 : i32, i32
  }
  func.func @transform_2(%arg0: i32) -> (i32, i32) {
    %c0_i32 = arith.constant 0 : i32
    %c0_i32_0 = arith.constant 0 : i32
    %c0_i32_1 = arith.constant 0 : i32
    return %c0_i32, %c0_i32_0 : i32, i32
  }
  func.func @transform_3(%arg0: i32) -> (i32, i32) {
    %c0_i32 = arith.constant 0 : i32
    %c0_i32_0 = arith.constant 0 : i32
    return %arg0, %c0_i32 : i32, i32
  }
}

</mosaic_0001>

<bundles_post_ra>
// kernel: window_attention_v2_forward.1
= control target key start
LH: loop header
LB: loop body
LE: loop exit
PB: predicated region body
PF: predicated region fallthrough
CT: control target
= control target key end

     0   :  { %8 = vsyncpa [#allocation3], 0  ;;  %s754_s0 = inlined_call_operand.hbm [shape: f32[128,32], index: 0, kind: input, shape index: {}]   ;;  %s755_s1 = inlined_call_operand.vmem [shape: f32[32,128], index: 1, kind: input, shape index: {}]   ;;  %s756_s2 = inlined_call_operand.vmem [shape: f32[1,128], index: 2, kind: input, shape index: {}]   ;;  %s757_s3 = inlined_call_operand.vmem [shape: f32[128,128], index: 3, kind: output, shape index: {}]  }
   0x1   :  { %10 = vsyncpa [#allocation3 + $0x1], 0  ;;  %s614_s12 = smov 0   ;;  %s616_s13 = smov 0  }
   0x2   :  { %s618_s14 = smov 0   ;;  %s620_s15 = smov 0  }
   0x3 LB: > { %s417_s16 = sadd.s32 4294967295, %s589_s15   ;;  %s634_s17 = sadd.s32 1, %s589_s15   ;;  %s589_s15 = sphi %s620_s15, %s764_s15   ;;  %s585_s14 = sphi %s618_s14, %s763_s14   ;;  %s581_s13 = sphi %s616_s13, %s762_s13   ;;  %s577_s12 = sphi %s614_s12, %s761_s12  }
   0x4   : > { %s20_s18 = ssub.s32 %s589_s15, %s634_s17  ;;  %s23_s19 = sadd.s32 1, %s585_s14 }
   0x5   : > { %p21_p0 = scmp.eq.s32.totalorder %s20_s18, 0  ;;  %p30_p1 = scmp.ne.s32.totalorder %s585_s14, %s581_s13 }
   0x6   : > { %p31_p2 = scmp.eq.s32.totalorder %s589_s15, 0  ;;  %p36_p3 = scmp.ne.s32.totalorder %s581_s13, %s577_s12 }
   0x7   : > { %s644_s20 = scalar_select %p21_p0, %s585_s14, %s23_s19  }
   0x8   : > { %p32_p4 = por %p31_p2, %p30_p1  ;;  %p37_p5 = scmp.eq.s32.totalorder %s417_s16, 0 }
   0x9   : > { %p490_p6 = scmp.lt.s32.totalorder %s589_s15, 2  ;;  %s134_s22 = sand.u32 1, %s585_s14  }
   0xa   : > { %p649_p7 = por %p37_p5, %p36_p3  ;;  %s421_s23 = sshll.u32 %s134_s22, 6 }
   0xb   : > { %s439_s24 = sshll.u32 %s589_s15, 10  ;;  %s138_s28 = scalar_lea.vmem [#allocation2], %s421_s23 }
   0xc   : > { %s658_s27 = scalar_lea.hbm %s754_s0, %s439_s24  ;;  %s145_s29 = sshll.u32 %s138_s28, 4  ;;  %s660_s29 = int_to_ptr.vmem [resolvable:$true] %s145_s29 }
   0xd   : > { %p662_p8 = pnand %p490_p6, %p32_p4  ;;  %s667_s4 = scalar_lea.sflag [#allocation3], %s134_s22 }
   0xe   : > { %s525_s5 = scalar_lea.hbm %s658_s27, 1024  ;;  %s530_s8 = scalar_lea.hbm %s754_s0, 2048 }
   0xf   : > { %p526_p10 = scmp.ne.s32.totalorder %s658_s27, %s525_s5  ;;  %p527_p11 = pneg %p662_p8 }
  0x10   : > { %p531_p0 = scmp.lt.u32.totalorder %s658_s27, %s754_s0  ;;  %p532_p1 = scmp.lt.u32.totalorder %s530_s8, %s525_s5 }
  0x11   : > { %p528_p12 = pnand %p527_p11, %p526_p10  ;;  %p534_p3 = scmp.lt.u32.totalorder %s525_s5, %s658_s27 }
  0x12   : > { %p533_p2 = por %p532_p1, %p531_p0 }
  0x13   : > { %p529_p13 = pneg %p528_p12 }
  0x14   : > { %p535_p4 = por %p534_p3, %p533_p2 }
  0x16   : > { %p536_p5 = pnand %p535_p4, %p529_p13 }
  0x18   : > { %539 = shalt.err (!%p536_p5)
}
  0x19   : > { %s540_s11 = scalar_lea.vmem %s660_s29, 1024  ;;  %s591_s12 = smov [#allocation2]  }
  0x1a   : > { %p541_p6 = scmp.ne.s32.totalorder %s660_s29, %s540_s11  ;;  %s545_s18 = sshll.u32 %s591_s12, 4  ;;  %s546_s18 = int_to_ptr.vmem [resolvable:$false] %s545_s18 }
  0x1b   : > { %s547_s19 = scalar_lea.vmem %s546_s18, 2048  ;;  %p548_p9 = scmp.lt.s32.totalorder %s660_s29, %s546_s18 }
  0x1c   : > { %p543_p10 = pnand %p541_p6, %p527_p11  ;;  %p549_p0 = scmp.lt.s32.totalorder %s547_s19, %s540_s11 }
  0x1e   : > { %p544_p12 = pneg %p543_p10  ;;  %p550_p1 = por %p549_p0, %p548_p9 }
  0x20   : > { %p551_p2 = pnand %p550_p1, %p544_p12 }
  0x22   : > { %554 = shalt.err (!%p551_p2)
}
  0x23   : > { %s592_s22 = smov 128   ;;  %s593_s23 = smov 8  }
  0x24   : > { %489 = dma.hbm_to_vmem [thread:$0]  (!%p662_p8), %s658_s27, 1024, %s660_s29, %s667_s4, %s592_s22, %s592_s22, %s593_s23  }
  0x25   : > { %p153_p11 = scmp.lt.s32.totalorder %s589_s15, 3  ;;  %p760_p13 = scmp.ge.s32.totalorder %s589_s15, 1 }
  0x27   : > { %p154_p3 = pnand %p760_p13, %p153_p11 }
  0x28   : > { %s159_s24 = sand.u32 (!%p154_p3), 1, %s581_s13  }
  0x29   : > { %157 = sbr.rel (%p154_p3) target bundleno = 281 (0x119), region = 32  ;;  %s425_s25 = sshll.u32 (!%p154_p3), %s159_s24, 6 }
  0x2a   : > { %s160_s26 = scalar_lea.sflag (!%p154_p3), [#allocation3], %s159_s24  ;;  %s699_s28 = scalar_lea.vmem (!%p154_p3), [#allocation2], %s425_s25 }
  0x30   : > { %572 = dma.done.wait (%p649_p7), %s160_s26, 1024  }
  0x31   : > { %574 = vsyncadd (%p649_p7), %s160_s26, 4294966272  ;;  %vm212_vm0 = vcmask 261120   ;;  %v201_v0 = vld [vmem:[%s755_s1] sm:$0xff]  ;;  %v202_v1 = vld [vmem:[%s755_s1 + $0x8] sm:$0xff]  ;;  %s426_s8 = sshll.u32 %s417_s16, 3 }
  0x32   : > { %v203_v2 = vld [vmem:[%s755_s1 + $0x10] sm:$0xff]  ;;  %v472_v3 = vpack.c.bf16 %v202_v1, %v201_v0  ;;  %v204_v4 = vld [vmem:[%s755_s1 + $0x18] sm:$0xff]  ;;  %v193_v5 = vld [vmem:[%s699_s28] sm:$0xff]  ;;  %p188_p7 = scmp.lt.s32.totalorder %s426_s8, 15 }
  0x33   : > { %v197_v6 = vld [vmem:[%s699_s28 + $0x20] sm:$0xff]  ;;  %v476_v7 = vpack.c.bf16 %v204_v4, %v203_v2  ;;  %460 = vmatprep.mubr.msk.f32.mxu0 %vm212_vm0, %v193_v5  ;;  %v194_v8 = vld [vmem:[%s699_s28 + $0x8] sm:$0xff]  ;;  %v195_v10 = vld [vmem:[%s699_s28 + $0x10] sm:$0xff] }
  0x34   : > { %466 = vmatprep.mubr.msk.f32.mxu1 %vm212_vm0, %v197_v6  ;;  %473 = vmatprep.subr.bf16.mxu0 %v472_v3  ;;  %v198_v9 = vld [vmem:[%s699_s28 + $0x28] sm:$0xff]  ;;  %v199_v11 = vld [vmem:[%s699_s28 + $0x30] sm:$0xff]  ;;  %v196_v12 = vld [vmem:[%s699_s28 + $0x18] sm:$0xff]  ;;  %s766_s8 = smov (!%p188_p7, %s426_s8), 15 }
  0x35   : > { %480 = vmatprep.subr.bf16.mxu1 %v472_v3  ;;  %475 = vmatpush3.bf16.msra.mxu0 %v472_v3  ;;  %v200_v13 = vld [vmem:[%s699_s28 + $0x38] sm:$0xff]  ;;  %s427_s9 = sshll.u32 %s766_s8, 3  ;;  %v428_v14 = vld [vmem:[%s756_s2] ss:$0 sm:$0xff] }
  0x36   : > { %482 = vmatpush3.bf16.msra.mxu1 %v472_v3  ;;  %477 = vmatprep.subr.bf16.mxu0 %v476_v7  ;;  %s191_s19 = scalar_lea.vmem %s757_s3, %s427_s9 }
  0x37   : > { %481 = vmatprep.subr.bf16.mxu1 %v476_v7 }
  0x39   : > { %479 = vmatpush3.bf16.msra.mxu0 %v476_v7 }
  0x3a   : > { %483 = vmatpush3.bf16.msra.mxu1 %v476_v7 }
  0x3c   : > { %461 = vmatmul.mubr.msk.f32.vlgmr.msra.gmra.mrb[0].mxu0 %vm212_vm0, %v194_v8 }
  0x3d   : > { %467 = vmatmul.mubr.msk.f32.vlgmr.msra.gmra.mrb[0].mxu1 %vm212_vm0, %v198_v9  ;;  %463 = vmatprep.mubr.msk.f32.mxu0 %vm212_vm0, %v195_v10 }
  0x3e   : > { %469 = vmatprep.mubr.msk.f32.mxu1 %vm212_vm0, %v199_v11 }
  0x40   : > { %464 = vmatmul.mubr.msk.f32.gmra.mrb[2].mxu0 %vm212_vm0, %v196_v12 }
  0x41   : > { %470 = vmatmul.mubr.msk.f32.gmra.mrb[2].mxu1 %vm212_vm0, %v200_v13 }
 0x10f   : > { %v462_v15 = vpop.f32.mrb[0].mxu0 }
 0x110   : > { %v468_v16 = vpop.f32.mrb[0].mxu1  ;;  %v309_v17 = vadd.f32 %v462_v15, %v428_v14  ;;  %v303_v19 = vpop.f32.mrb[1].mxu0 }
 0x111   : > { %v329_v18 = vadd.f32 %v468_v16, %v428_v14  ;;  %v323_v20 = vpop.f32.mrb[1].mxu1  ;;  %v304_v21 = vadd.f32 %v428_v14, %v303_v19 }
 0x112   : > { %v324_v22 = vadd.f32 %v428_v14, %v323_v20  ;;  %343 = vst [vmem:[%s191_s19 + $0x8] sm:$0xff] %v309_v17 }
 0x113   : > { %347 = vst [vmem:[%s191_s19 + $0x28] sm:$0xff] %v329_v18  ;;  %342 = vst [vmem:[%s191_s19] sm:$0xff] %v304_v21  ;;  %v465_v23 = vpop.f32.mrb[2].mxu0 }
 0x114   : > { %346 = vst [vmem:[%s191_s19 + $0x20] sm:$0xff] %v324_v22  ;;  %v471_v24 = vpop.f32.mrb[2].mxu1  ;;  %v319_v25 = vadd.f32 %v465_v23, %v428_v14  ;;  %v313_v27 = vpop.f32.mrb[3].mxu0 }
 0x115   : > { %v339_v26 = vadd.f32 %v471_v24, %v428_v14  ;;  %v333_v28 = vpop.f32.mrb[3].mxu1  ;;  %v314_v29 = vadd.f32 %v428_v14, %v313_v27 }
 0x116   : > { %v334_v30 = vadd.f32 %v428_v14, %v333_v28  ;;  %345 = vst [vmem:[%s191_s19 + $0x18] sm:$0xff] %v319_v25 }
 0x117   : > { %349 = vst [vmem:[%s191_s19 + $0x38] sm:$0xff] %v339_v26  ;;  %344 = vst [vmem:[%s191_s19 + $0x10] sm:$0xff] %v314_v29 }
 0x118   : > { %348 = vst [vmem:[%s191_s19 + $0x30] sm:$0xff] %v334_v30 }
 0x119 PF: > { %p13_p8 = scmp.ge.s32.totalorder %s634_s17, 4   ;;  %s761_s12 = smov %s581_s13 }
 0x11a   : > { %s762_s13 = smov %s585_s14  ;;  %s763_s14 = smov %s644_s20 }
 0x11b   : > { %s764_s15 = smov %s634_s17  ;;  %15 = sbr.rel (!%p13_p8) target bundleno = 3 (0x3), region = 72 }
 0x122   :  { %372 = vsyncpa [#allocation3], 1 }
 0x123   :  { %374 = vsyncpa [#allocation3 + $0x1], 1 }

</bundles_post_ra>
